<compile_context>
chip_gen: v6e
topology: v6e:2x2x1
jax: 0.10.0
libtpu: 0.0.40
codegen_flags: <defaults>
</compile_context>

<pallas_src>
import functools

import jax
import jax.numpy as jnp
from jax import lax
from jax.scipy.linalg import block_diag
from jax.experimental import pallas as pl
from jax.experimental.pallas import tpu as pltpu


def _modulate_kernel(x_ref, w1_ref, b1_ref, w2_ref, b2_ref, *rest, fuse_gate):
    # x_ref: (Cg, T) f32     w1_ref: (Cmg, Cg) bf16   b1_ref: (Cmg, 1) f32
    # w2_ref: (Cg, Cmg) bf16 b2_ref: (Cg, 1) f32
    # optional g_ref: (Cg, T)                         o_ref: (Cg, T)
    if fuse_gate:
        g_ref, o_ref = rest
    else:
        (o_ref,) = rest

    xb = x_ref[...].astype(jnp.bfloat16)                                  # bf16 MXU operand
    h = jnp.dot(w1_ref[...], xb, preferred_element_type=jnp.float32)      # (Cmg, T), f32 acc
    h = jnp.maximum(h + b1_ref[...], 0.0)                                 # bias + ReLU in f32
    y = jnp.dot(w2_ref[...], h.astype(jnp.bfloat16),
                preferred_element_type=jnp.float32)                       # (Cg, T), f32 acc
    # sigmoid(z) == 0.5*(tanh(z/2)+1): keeps the transcendental on the EUP,
    # no VALU divide in the epilogue.
    gate = 0.5 * (jnp.tanh(0.5 * (y + b2_ref[...])) + 1.0)
    if fuse_gate:
        gate = gate * g_ref[...].astype(jnp.float32)
    o_ref[...] = gate.astype(o_ref.dtype)


def _vmem_capacity_bytes():
    try:
        return int(pltpu.get_tpu_info().vmem_capacity_bytes)
    except Exception:
        return 64 << 20  # conservative (v7x-sized) fallback


def _pick_tile_hw(HW, n_parallel_blocks, bytes_per_lane, vmem_budget, c_blk,
                  requested=None):
    """Lane-dense pixel tile: multiple of 128 (or full extent), VMEM-sized."""
    if requested is not None:
        t = int(requested)
    else:
        t = vmem_budget // max(bytes_per_lane, 1)
        t = min(t, (8 << 20) // (4 * c_blk))          # cap x/out block at ~8 MiB
    t = max(128, (t // 128) * 128)
    if t >= HW:
        # Full extent, unless that leaves < 2 grid steps (v7x shards "parallel"
        # axes across 2 TensorCores) and the spatial extent can be split.
        if n_parallel_blocks >= 2 or HW < 256:
            return HW
        return max(128, ((HW // 2) // 128) * 128)
    return t


@functools.partial(jax.jit, static_argnames=("num_groups", "tile_hw"))
def modulate_forward(x, w1, b1, w2, b2, *, num_groups, gate=None, tile_hw=None):
    """Forward pass of ModulateModule.

    x:  (N, C, H, W) f32 activations.
    w1: (Cmid, C//G, 1, 1), b1: (Cmid,)   -- first grouped 1x1 conv
    w2: (C, Cmid//G, 1, 1), b2: (C,)      -- second grouped 1x1 conv
    gate: optional (N, C, H, W); if given, the kernel fuses the downstream
          modulation and returns gate * sigmoid(...) instead of the bare gate.
    """
    N, C, H, W = x.shape
    Cmid = w1.shape[0]
    G = num_groups
    assert C % G == 0 and Cmid % G == 0, "channels must be divisible by num_groups"
    C_pg, Cmid_pg = C // G, Cmid // G

    w1g = w1[:, :, 0, 0].reshape(G, Cmid_pg, C_pg)     # per-group (out, in) blocks
    w2g = w2[:, :, 0, 0].reshape(G, C_pg, Cmid_pg)

    # Per-group weight tiling when the blocks fill MXU sublanes; tiny groups use
    # one dense block-diagonal weight instead (pure memory streaming regime).
    use_group_grid = (G > 1) and (C_pg >= 8) and (Cmid_pg >= 8)
    if use_group_grid:
        G_eff, Cg, Cmg = G, C_pg, Cmid_pg
        W1 = w1g.astype(jnp.bfloat16)                                  # (G, Cmid/G, C/G)
        W2 = w2g.astype(jnp.bfloat16)                                  # (G, C/G, Cmid/G)
        B1 = b1.reshape(G, Cmid_pg, 1).astype(jnp.float32)
        B2 = b2.reshape(G, C_pg, 1).astype(jnp.float32)
    else:
        G_eff, Cg, Cmg = 1, C, Cmid
        W1 = block_diag(*[w1g[g] for g in range(G)]).astype(jnp.bfloat16)[None]
        W2 = block_diag(*[w2g[g] for g in range(G)]).astype(jnp.bfloat16)[None]
        B1 = b1.reshape(1, Cmid, 1).astype(jnp.float32)
        B2 = b2.reshape(1, C, 1).astype(jnp.float32)

    # Channel-major 4D view (free reshapes): (N, G_eff, C/G_eff, H*W).
    HW = H * W
    x4 = x.reshape(N, G_eff, Cg, HW)
    fuse_gate = gate is not None
    if fuse_gate:
        g4 = gate.reshape(N, G_eff, Cg, HW)

    # --- Explicit VMEM accounting drives tile size and the scoped limit. ---
    vmem_cap = _vmem_capacity_bytes()
    io_lane = (6 if fuse_gate else 4) * 4 * Cg         # 2x in + 2x out (+2x gate) f32 blocks
    interm_lane = 10 * Cg + 6 * Cmg                    # xb, h, hb, y, epilogue temps
    bytes_per_lane = io_lane + interm_lane
    w_bytes = 2 * 2 * 2 * Cmg * Cg                     # 2 weights x 2 buffers x bf16
    b_bytes = 2 * 4 * 128 * (Cmg + Cg)                 # lane-padded f32 bias blocks x 2 buffers
    budget = max(vmem_cap // 2 - w_bytes - b_bytes, 4 << 20)

    t = _pick_tile_hw(HW, N * G_eff, bytes_per_lane, budget, Cg, tile_hw)
    n_hw = pl.cdiv(HW, t)

    est = bytes_per_lane * t + w_bytes + b_bytes
    vmem_limit = int(min(max(est + (16 << 20), 32 << 20), (vmem_cap * 3) // 4))

    def io_map(n, g, j):
        return (n, g, 0, j)

    def w_map(n, g, j):
        return (g, 0, 0)

    x_spec = pl.BlockSpec((None, None, Cg, t), io_map)
    out_spec = pl.BlockSpec((None, None, Cg, t), io_map)
    in_specs = [
        x_spec,                                        # x tile
        pl.BlockSpec((None, Cmg, Cg), w_map),          # W1 (per-group, grid-resident)
        pl.BlockSpec((None, Cmg, 1), w_map),           # b1
        pl.BlockSpec((None, Cg, Cmg), w_map),          # W2
        pl.BlockSpec((None, Cg, 1), w_map),            # b2
    ]
    args = [x4, W1, B1, W2, B2]
    if fuse_gate:
        in_specs.append(pl.BlockSpec((None, None, Cg, t), io_map))
        args.append(g4)
    # TODO(synk): mark the weight/bias specs pipeline_mode=pl.Buffered(1)
    # (single-buffer grid-invariant residents) once verified on target jaxlib.
    # TODO(synk): optionally emit the gate in bf16 when the consumer accepts it
    # (halves output HBM bytes); kept f32 here to match the module's dtype.

    out4 = pl.pallas_call(
        functools.partial(_modulate_kernel, fuse_gate=fuse_gate),
        out_shape=jax.ShapeDtypeStruct((N, G_eff, Cg, HW), x.dtype),
        grid_spec=pltpu.PrefetchScalarGridSpec(
            num_scalar_prefetch=0,
            grid=(N, G_eff, n_hw),
            in_specs=in_specs,
            out_specs=out_spec,
        ),
        compiler_params=pltpu.CompilerParams(
            dimension_semantics=("parallel", "parallel", "parallel"),
            vmem_limit_bytes=vmem_limit),
    )(*args)

    # Free reshape back to NCHW.
    return out4.reshape(N, C, H, W)


def _reference_forward(x, w1, b1, w2, b2, num_groups):
    """Pure-JAX reference using grouped conv, mirrors the PyTorch module."""
    dn = ("NCHW", "OIHW", "NCHW")
    h = lax.conv_general_dilated(x, w1, (1, 1), "VALID",
                                 feature_group_count=num_groups,
                                 dimension_numbers=dn,
                                 precision=lax.Precision.HIGHEST)
    h = jnp.maximum(h + b1.reshape(1, -1, 1, 1), 0.0)
    y = lax.conv_general_dilated(h, w2, (1, 1), "VALID",
                                 feature_group_count=num_groups,
                                 dimension_numbers=dn,
                                 precision=lax.Precision.HIGHEST)
    return jax.nn.sigmoid(y + b2.reshape(1, -1, 1, 1))


if __name__ == "__main__":
    key = jax.random.PRNGKey(0)

    def make_params(k, C, G, compressions):
        Cmid = C // compressions
        k1, kb1, k2, kb2 = jax.random.split(k, 4)
        w1 = jax.random.normal(k1, (Cmid, C // G, 1, 1), jnp.float32) * (2.0 / Cmid) ** 0.5
        b1 = 0.1 * jax.random.normal(kb1, (Cmid,), jnp.float32)
        w2 = jax.random.normal(k2, (C, Cmid // G, 1, 1), jnp.float32) * (2.0 / C) ** 0.5
        b2 = 0.1 * jax.random.normal(kb2, (C,), jnp.float32)
        return w1, b1, w2, b2

    # Case 1: small shape (tiny per-group channels -> dense block-diagonal path).
    kx1, kp1, kg1, kx2, kp2, key = jax.random.split(key, 6)
    N, C, H, W, G = 2, 8, 16, 16, 4
    x1 = jax.random.normal(kx1, (N, C, H, W), jnp.float32)
    w1a, b1a, w2a, b2a = make_params(kp1, C, G, 2)
    y1 = jax.block_until_ready(modulate_forward(x1, w1a, b1a, w2a, b2a, num_groups=G))
    r1 = _reference_forward(x1, w1a, b1a, w2a, b2a, G)
    assert y1.shape == (N, C, H, W)
    assert jnp.allclose(y1, r1, atol=1e-2, rtol=1e-2), "dense-path mismatch"

    # Case 2: per-group weight-tiled path (C/G >= 8, Cmid/G >= 8).
    N2, C2, G2 = 1, 64, 4
    x2 = jax.random.normal(kx2, (N2, C2, H, W), jnp.float32)
    w1b, b1b, w2b, b2b = make_params(kp2, C2, G2, 2)
    y2 = jax.block_until_ready(modulate_forward(x2, w1b, b1b, w2b, b2b, num_groups=G2))
    r2 = _reference_forward(x2, w1b, b1b, w2b, b2b, G2)
    assert y2.shape == (N2, C2, H, W)
    assert jnp.allclose(y2, r2, atol=1e-2, rtol=1e-2), "group-path mismatch"

    # Case 3: fused downstream modulation (gate * sigmoid) in one pass.
    g1 = jax.random.normal(kg1, (N, C, H, W), jnp.float32)
    y3 = jax.block_until_ready(
        modulate_forward(x1, w1a, b1a, w2a, b2a, num_groups=G, gate=g1))
    assert jnp.allclose(y3, r1 * g1, atol=2e-2, rtol=2e-2), "fused-gate mismatch"

    print("KERNEL_OK")
</pallas_src>

<mosaic_0001>
module attributes {stable_mosaic.version = 11 : i64} {
  func.func @_modulate_kernel(%arg0: i32, %arg1: i32, %arg2: i32, %arg3: memref<1x1x8x256xf32, #tpu.memory_space<vmem>>, %arg4: memref<1x4x8xbf16, #tpu.memory_space<vmem>>, %arg5: memref<1x4x1xf32, #tpu.memory_space<vmem>>, %arg6: memref<1x8x4xbf16, #tpu.memory_space<vmem>>, %arg7: memref<1x8x1xf32, #tpu.memory_space<vmem>>, %arg8: memref<1x1x8x256xf32, #tpu.memory_space<vmem>>) attributes {dimension_semantics = [#tpu.dimension_semantics<parallel>, #tpu.dimension_semantics<parallel>, #tpu.dimension_semantics<parallel>], iteration_bounds = array<i64: 2, 1, 1>, scalar_prefetch = 0 : i64, scratch_operands = 0 : i64, tpu.core_type = #tpu.core_type<tc>, window_params = [{transform_indices = @transform_0, window_bounds = array<i64: 1, 1, 8, 256>}, {transform_indices = @transform_1, window_bounds = array<i64: 1, 4, 8>}, {transform_indices = @transform_2, window_bounds = array<i64: 1, 4, 1>}, {transform_indices = @transform_3, window_bounds = array<i64: 1, 8, 4>}, {transform_indices = @transform_4, window_bounds = array<i64: 1, 8, 1>}, {transform_indices = @transform_5, window_bounds = array<i64: 1, 1, 8, 256>}]} {
    %c0 = arith.constant 0 : index
    %c0_0 = arith.constant 0 : index
    %c0_1 = arith.constant 0 : index
    %c0_2 = arith.constant 0 : index
    %0 = vector.load %arg3[%c0, %c0_0, %c0_1, %c0_2] : memref<1x1x8x256xf32, #tpu.memory_space<vmem>>, vector<1x1x8x256xf32>
    %1 = vector.shape_cast %0 : vector<1x1x8x256xf32> to vector<8x256xf32>
    %2 = arith.truncf %1 : vector<8x256xf32> to vector<8x256xbf16>
    %c0_3 = arith.constant 0 : index
    %c0_4 = arith.constant 0 : index
    %c0_5 = arith.constant 0 : index
    %3 = vector.load %arg4[%c0_3, %c0_4, %c0_5] : memref<1x4x8xbf16, #tpu.memory_space<vmem>>, vector<1x4x8xbf16>
    %4 = vector.shape_cast %3 : vector<1x4x8xbf16> to vector<4x8xbf16>
    %cst = arith.constant dense<0.000000e+00> : vector<4x256xf32>
    %5 = tpu.matmul %4, %2, %cst {dimension_numbers = #tpu.dot_dimension_numbers<[1], [0], [0], [1], [0, 0, 1, 1], [], []>} : vector<4x8xbf16>, vector<8x256xbf16>, vector<4x256xf32> -> vector<4x256xf32>
    %c0_6 = arith.constant 0 : index
    %c0_7 = arith.constant 0 : index
    %c0_8 = arith.constant 0 : index
    %6 = vector.load %arg5[%c0_6, %c0_7, %c0_8] : memref<1x4x1xf32, #tpu.memory_space<vmem>>, vector<1x4x1xf32>
    %7 = vector.shape_cast %6 : vector<1x4x1xf32> to vector<4x1xf32>
    %8 = vector.broadcast %7 : vector<4x1xf32> to vector<4x256xf32>
    %9 = arith.addf %5, %8 : vector<4x256xf32>
    %cst_9 = arith.constant 0.000000e+00 : f32
    %10 = vector.broadcast %cst_9 : f32 to vector<4x256xf32>
    %11 = arith.maximumf %9, %10 : vector<4x256xf32>
    %c0_10 = arith.constant 0 : index
    %c0_11 = arith.constant 0 : index
    %c0_12 = arith.constant 0 : index
    %12 = vector.load %arg6[%c0_10, %c0_11, %c0_12] : memref<1x8x4xbf16, #tpu.memory_space<vmem>>, vector<1x8x4xbf16>
    %13 = vector.shape_cast %12 : vector<1x8x4xbf16> to vector<8x4xbf16>
    %14 = arith.truncf %11 : vector<4x256xf32> to vector<4x256xbf16>
    %cst_13 = arith.constant dense<0.000000e+00> : vector<8x256xf32>
    %15 = tpu.matmul %13, %14, %cst_13 {dimension_numbers = #tpu.dot_dimension_numbers<[1], [0], [0], [1], [0, 0, 1, 1], [], []>} : vector<8x4xbf16>, vector<4x256xbf16>, vector<8x256xf32> -> vector<8x256xf32>
    %c0_14 = arith.constant 0 : index
    %c0_15 = arith.constant 0 : index
    %c0_16 = arith.constant 0 : index
    %16 = vector.load %arg7[%c0_14, %c0_15, %c0_16] : memref<1x8x1xf32, #tpu.memory_space<vmem>>, vector<1x8x1xf32>
    %17 = vector.shape_cast %16 : vector<1x8x1xf32> to vector<8x1xf32>
    %18 = vector.broadcast %17 : vector<8x1xf32> to vector<8x256xf32>
    %19 = arith.addf %15, %18 : vector<8x256xf32>
    %cst_17 = arith.constant 5.000000e-01 : f32
    %20 = vector.broadcast %cst_17 : f32 to vector<8x256xf32>
    %21 = arith.mulf %20, %19 : vector<8x256xf32>
    %22 = math.tanh %21 : vector<8x256xf32>
    %cst_18 = arith.constant 1.000000e+00 : f32
    %23 = vector.broadcast %cst_18 : f32 to vector<8x256xf32>
    %24 = arith.addf %22, %23 : vector<8x256xf32>
    %cst_19 = arith.constant 5.000000e-01 : f32
    %25 = vector.broadcast %cst_19 : f32 to vector<8x256xf32>
    %26 = arith.mulf %25, %24 : vector<8x256xf32>
    %c0_20 = arith.constant 0 : index
    %c0_21 = arith.constant 0 : index
    %c0_22 = arith.constant 0 : index
    %c0_23 = arith.constant 0 : index
    %27 = vector.load %arg8[%c0_20, %c0_21, %c0_22, %c0_23] : memref<1x1x8x256xf32, #tpu.memory_space<vmem>>, vector<1x1x8x256xf32>
    %28 = vector.shape_cast %27 : vector<1x1x8x256xf32> to vector<8x256xf32>
    %29 = vector.shape_cast %26 : vector<8x256xf32> to vector<1x1x8x256xf32>
    tpu.vector_store %arg8[%c0_20, %c0_21, %c0_22, %c0_23], %29 {strides = array<i32>} : memref<1x1x8x256xf32, #tpu.memory_space<vmem>>, vector<1x1x8x256xf32>,
    return
  }
  func.func @transform_0(%arg0: i32, %arg1: i32, %arg2: i32) -> (i32, i32, i32, i32) {
    %c0_i32 = arith.constant 0 : i32
    %c0_i32_0 = arith.constant 0 : i32
    return %arg0, %arg1, %c0_i32, %arg2 : i32, i32, i32, i32
  }
  func.func @transform_1(%arg0: i32, %arg1: i32, %arg2: i32) -> (i32, i32, i32) {
    %c0_i32 = arith.constant 0 : i32
    %c0_i32_0 = arith.constant 0 : i32
    %c0_i32_1 = arith.constant 0 : i32
    return %arg1, %c0_i32, %c0_i32_0 : i32, i32, i32
  }
  func.func @transform_2(%arg0: i32, %arg1: i32, %arg2: i32) -> (i32, i32, i32) {
    %c0_i32 = arith.constant 0 : i32
    %c0_i32_0 = arith.constant 0 : i32
    %c0_i32_1 = arith.constant 0 : i32
    return %arg1, %c0_i32, %c0_i32_0 : i32, i32, i32
  }
  func.func @transform_3(%arg0: i32, %arg1: i32, %arg2: i32) -> (i32, i32, i32) {
    %c0_i32 = arith.constant 0 : i32
    %c0_i32_0 = arith.constant 0 : i32
    %c0_i32_1 = arith.constant 0 : i32
    return %arg1, %c0_i32, %c0_i32_0 : i32, i32, i32
  }
  func.func @transform_4(%arg0: i32, %arg1: i32, %arg2: i32) -> (i32, i32, i32) {
    %c0_i32 = arith.constant 0 : i32
    %c0_i32_0 = arith.constant 0 : i32
    %c0_i32_1 = arith.constant 0 : i32
    return %arg1, %c0_i32, %c0_i32_0 : i32, i32, i32
  }
  func.func @transform_5(%arg0: i32, %arg1: i32, %arg2: i32) -> (i32, i32, i32, i32) {
    %c0_i32 = arith.constant 0 : i32
    %c0_i32_0 = arith.constant 0 : i32
    return %arg0, %arg1, %c0_i32, %arg2 : i32, i32, i32, i32
  }
}

</mosaic_0001>

<bundles_post_ra>
// kernel: modulate_forward.1
= control target key start
LH: loop header
LB: loop body
LE: loop exit
PB: predicated region body
PF: predicated region fallthrough
CT: control target
= control target key end

     0   :  { %s778_s18 = smov 0   ;;  %s780_s19 = smov 0   ;;  %s830_s0 = inlined_call_operand.vmem [shape: f32[2,1,8,256], index: 0, kind: input, shape index: {}]   ;;  %s831_s1 = inlined_call_operand.vmem [shape: bf16[1,4,8], index: 1, kind: input, shape index: {}]   ;;  %s832_s2 = inlined_call_operand.vmem [shape: f32[1,4,1], index: 2, kind: input, shape index: {}]   ;;  %s833_s3 = inlined_call_operand.vmem [shape: bf16[1,8,4], index: 3, kind: input, shape index: {}]   ;;  %s834_s4 = inlined_call_operand.vmem [shape: f32[1,8,1], index: 4, kind: input, shape index: {}]   ;;  %s835_s5 = inlined_call_operand.vmem [shape: f32[2,1,8,256], index: 5, kind: output, shape index: {}]  }
   0x1   :  { %s782_s20 = smov 0  }
   0x2 LB: > { %s34_s21 = sadd.s32 1, %s741_s19  ;;  %p680_p0 = scmp.ge.s32.totalorder %s745_s20, 1  ;;  %s745_s20 = sphi %s782_s20, %s15_s20   ;;  %s741_s19 = sphi %s780_s19, %s837_s19   ;;  %s737_s18 = sphi %s778_s18, %s836_s18  }
   0x3   : > { %p36_p1 = scmp.ge.s32.totalorder %s34_s21, 2  ;;  %p259_p2 = scmp.lt.s32.totalorder %s745_s20, 3 }
   0x5   : > { %s839_s21 = smov (%p36_p1, %s34_s21), 0  ;;  %p260_p3 = pnand %p680_p0, %p259_p2 }
   0x6   : > { %p320_p4 = scmp.lt.s32.totalorder (!%p260_p3), %s737_s18, 1 }
   0x7   : > { %263 = sbr.rel (%p260_p3) target bundleno = 445 (0x1bd), region = 40 }
   0xc   : > { %v747_v0 = vmov 0   ;;  %v369_v1 = vld [vmem:[%s832_s2] sm:$0xf]  ;;  %s841_s18 = smov (!%p320_p4, %s737_s18), 1  ;;  %vm379_vm0 = vcmask 1043456   ;;  %vm375_vm1 = vcmask 64512  }
   0xd   : > { %418 = vmatprep.mubr.bf16.mxu0 %v747_v0  ;;  %718 = vset.pattern.permute.xlu0 %v747_v0  ;;  %v432_v2 = vld [vmem:[%s834_s4] sm:$0xff]  ;;  %s691_s26 = sshll.u32 %s841_s18, 4  ;;  %vm442_vm2 = vcmask 1041408   ;;  %vm438_vm3 = vcmask 31744  }
   0xe   : > { %372 = vperm.xlu0 %718, %v369_v1   ;;  %481 = vmatprep.mubr.bf16.mxu1 %v747_v0  ;;  %s331_s29 = scalar_lea.vmem %s830_s0, %s691_s26  ;;  %v368_v8 = vld [vmem:[%s831_s1] sm:$0x3]  ;;  %s361_s11 = scalar_lea.vmem %s835_s5, %s691_s26 }
   0xf   : > { %v365_v3 = vld [vmem:[%s331_s29 + $0x8] sm:$0xff]  ;;  %v364_v4 = vld [vmem:[%s331_s29] sm:$0xff] }
  0x10   : > { %v367_v5 = vpack.c.bf16 %v365_v3, %v365_v3  ;;  %v366_v6 = vpack.c.bf16 %v364_v4, %v364_v4  ;;  %v429_v21 = vld [vmem:[%s833_s3] sm:$0xf] }
  0x12   : > { %435 = vperm.xlu0 %718, %v432_v2   ;;  %685 = vmatprep.subr.msk.bf16.mxu0 %vm379_vm0, %v367_v5  ;;  %v381_v7 = vsel %vm379_vm0, %v366_v6, 0 }
  0x13   : > { %401 = vmatpush1.bf16.msra.mxu0 %v381_v7 }
  0x16   : > { %686 = vmatmul.mubr.msk.bf16.vlgmr.msra.gmra.mxu0 %vm375_vm1, %v368_v8 }
  0x89   : > { %v373_v9 = vpop.permute.xlu0 %372 }
  0x8d   : > { %v436_v22 = vpop.permute.xlu0 %435 }
  0xd6   : > { %v420_v10 = vpop.f32.mrf.mxu0 }
  0xd7   : > { %v421_v11 = vadd.f32 %v420_v10, %v373_v9 }
  0xd8   : > { %v422_v12 = vpop.f32.mrf.mxu0 }
  0xd9   : > { %v427_v13 = vmax.f32 %v421_v11, 0.0  ;;  %v423_v14 = vadd.f32 %v422_v12, %v373_v9 }
  0xda   : > { %v424_v15 = vpop.f32.mrf.mxu0 }
  0xdb   : > { %v430_v16 = vpack.c.bf16 %v427_v13, %v427_v13  ;;  %v428_v17 = vmax.f32 %v423_v14, 0.0 }
  0xdc   : > { %v425_v18 = vpop.f32.mrf.mxu0 }
  0xdd   : > { %v431_v19 = vpack.c.bf16 %v428_v17, %v428_v17  ;;  %v444_v20 = vsel %vm442_vm2, %v430_v16, 0 }
  0xdf   : > { %687 = vmatprep.subr.msk.bf16.mxu1 %vm442_vm2, %v431_v19 }
  0xe0   : > { %464 = vmatpush1.bf16.msra.mxu1 %v444_v20 }
  0xe3   : > { %688 = vmatmul.mubr.msk.bf16.vlgmr.msra.gmra.mxu1 %vm438_vm3, %v429_v21 }
 0x1a3   : > { %v483_v23 = vpop.f32.mrf.mxu1 }
 0x1a4   : > { %v484_v24 = vadd.f32 %v483_v23, %v436_v22 }
 0x1a5   : > { %v485_v25 = vpop.f32.mrf.mxu1 }
 0x1a6   : > { %v490_v26 = vmul.f32 0.5, %v484_v24  ;;  %v486_v27 = vadd.f32 %v485_v25, %v436_v22 }
 0x1a7   : > { %v487_v28 = vpop.f32.mrf.mxu1 }
 0x1a8   : > { %719 = vtanh.f32 %v490_v26  ;;  %v491_v29 = vmul.f32 0.5, %v486_v27 }
 0x1a9   : > { %v488_v30 = vpop.f32.mrf.mxu1 }
 0x1aa   : > { %721 = vtanh.f32 %v491_v29 }
 0x1b5   : > { %v720_v31 = vpop.eup %719 }
 0x1b6   : > { %v494_v32 = vadd.f32 1.0, %v720_v31 }
 0x1b7   : > { %v722_v33 = vpop.eup %721 }
 0x1b8   : > { %v496_v34 = vmul.f32 0.5, %v494_v32  ;;  %v495_v35 = vadd.f32 1.0, %v722_v33 }
 0x1ba   : > { %498 = vst [vmem:[%s361_s11] sm:$0xff] %v496_v34  ;;  %v497_v36 = vmul.f32 0.5, %v495_v35 }
 0x1bc   : > { %499 = vst [vmem:[%s361_s11 + $0x8] sm:$0xff] %v497_v36 }
 0x1bd PF: > { %s15_s20 = sadd.s32 1, %s745_s20   ;;  %s836_s18 = smov %s741_s19 }
 0x1be   : > { %p12_p5 = scmp.ge.s32.totalorder %s15_s20, 4   ;;  %s837_s19 = smov %s839_s21 }
 0x1c0   :  { %14 = sbr.rel (!%p12_p5) target bundleno = 2 (0x2), region = 82 }

</bundles_post_ra>
